<compile_context>
chip_gen: v7x
topology: tpu7x:2x2x1
jax: 0.10.0
libtpu: 0.0.40
codegen_flags: <defaults>
</compile_context>

<pallas_src>
import math
import functools

import jax
import jax.numpy as jnp
from jax.experimental import pallas as pl
from jax.experimental.pallas import tpu as pltpu


def _attn_kernel(x_ref, w_qkv_ref, b_qkv_ref, w_out_ref, b_out_ref, o_ref,
                 *, n_head, scale, compute_dtype):
    # x_ref:      (1, T, C)        one batch element per grid step
    # w_qkv_ref:  (3, H, C, D)     per-(q/k/v, head) projection weights
    # b_qkv_ref:  (3, H, 1, D)     per-(q/k/v, head) biases (f32)
    # w_out_ref:  (H, D, C_pad)    fc_out weight, head-major, lane-padded
    # b_out_ref:  (1, C_pad)       fc_out bias, lane-padded (f32)
    # o_ref:      (1, T, C_pad)    lane-dense output block
    T = x_ref.shape[1]
    C = x_ref.shape[2]
    H = n_head
    D = C // H

    # Broadcast x once to (H, T, C) so every matmul below is a single
    # head-batched dot_general with the head as a *leading* batch dim.
    x = x_ref[0]                                               # (T, C)
    xh = jnp.broadcast_to(x[None, :, :], (H, T, C))

    # Head-major projections: q/k/v come out directly as (H, T, D); no lane
    # slicing of a fused (T, 3C) qkv and no (T, H, D) -> (H, T, D) transpose.
    def proj(w, b):                                            # w:(H,C,D) b:(H,1,D)
        return jnp.einsum('htc,hcd->htd', xh, w,
                          preferred_element_type=jnp.float32) + b

    qf = proj(w_qkv_ref[0], b_qkv_ref[0])                      # (H, T, D) f32
    kf = proj(w_qkv_ref[1], b_qkv_ref[1])
    vf = proj(w_qkv_ref[2], b_qkv_ref[2])

    # Fold 1/sqrt(D) into q (T*D work, not T*T); cast MXU operands once.
    q = (qf * scale).astype(compute_dtype)
    k = kf.astype(compute_dtype)
    v = vf.astype(compute_dtype)

    # Head-batched scores; rhs contracted on its last dim (no materialized k.T).
    s = jnp.einsum('hqd,hkd->hqk', q, k,
                   preferred_element_type=jnp.float32)         # (H, T, T) f32

    # Causal additive mask, built once per grid step. Finite value (not -inf) so
    # a row with zero valid keys yields garbage-but-finite output, never NaN.
    row = jax.lax.broadcasted_iota(jnp.int32, (T, T), 0)
    col = jax.lax.broadcasted_iota(jnp.int32, (T, T), 1)
    neg = jnp.where(row >= col, 0.0, -1e30).astype(jnp.float32)
    s = s + neg[None, :, :]

    # Softmax with deferred normalization (keep p unnormalized).
    m = jnp.max(s, axis=-1, keepdims=True)                     # (H, T, 1)
    p = jnp.exp(s - m)
    denom = jnp.sum(p, axis=-1, keepdims=True)                 # (H, T, 1)

    o = jnp.einsum('hqk,hkd->hqd', p.astype(compute_dtype), v,
                   preferred_element_type=jnp.float32)         # (H, T, D) f32
    o = o * pl.reciprocal(denom, approx=True)                  # EUP slot, ~free

    # Output projection: per-head batched matmul then sum over the head axis.
    #   sum_h attn_h @ W_out[h*D:(h+1)*D, :]  ==  concat(heads) @ W_out
    # W_out's N dim is zero-padded to a 128-lane multiple -> unmasked stores.
    part = jnp.einsum('htd,hdc->htc', o.astype(compute_dtype), w_out_ref[...],
                      preferred_element_type=jnp.float32)      # (H, T, C_pad)
    out = jnp.sum(part, axis=0) + b_out_ref[...]               # (T, C_pad)

    o_ref[0] = out.astype(o_ref.dtype)


def causal_self_attention(x, w_attn, b_attn, w_out, b_out, n_head,
                          *, compute_dtype=jnp.float32):
    """x: (B, T, C). Weights in x @ W + b convention (torch weight transposed)."""
    B, T, C = x.shape
    H = n_head
    assert C % H == 0
    D = C // H

    LANES = 128
    C_pad = ((C + LANES - 1) // LANES) * LANES

    # ---- wrapper-side layout plumbing (no compute hoisted out of the kernel) ----
    # fc_attn weight (C, 3C) -> (3, H, C, D): per-(qkv, head) blocks, head-major.
    w_qkv = (w_attn.reshape(C, 3, H, D).transpose(1, 2, 0, 3)
             .astype(compute_dtype))                           # (3, H, C, D)
    b_qkv = b_attn.reshape(3, H, 1, D).astype(jnp.float32)     # (3, H, 1, D)
    # fc_out weight (C, C) -> (H, D, C), lane dim zero-padded to C_pad.
    w_out_h = w_out.reshape(H, D, C)
    b_out_p = b_out.reshape(1, C)
    if C_pad != C:
        w_out_h = jnp.pad(w_out_h, ((0, 0), (0, 0), (0, C_pad - C)))
        b_out_p = jnp.pad(b_out_p, ((0, 0), (0, C_pad - C)))
    w_out_h = w_out_h.astype(compute_dtype)
    b_out_p = b_out_p.astype(jnp.float32)
    x_c = x.astype(compute_dtype)

    kernel = functools.partial(_attn_kernel, n_head=H, scale=1.0 / math.sqrt(D),
                               compute_dtype=compute_dtype)

    out_padded = pl.pallas_call(
        kernel,
        out_shape=jax.ShapeDtypeStruct((B, T, C_pad), x.dtype),
        grid_spec=pltpu.PrefetchScalarGridSpec(
            num_scalar_prefetch=0,
            grid=(B,),
            in_specs=[
                pl.BlockSpec((1, T, C), lambda b: (b, 0, 0)),            # x
                pl.BlockSpec((3, H, C, D), lambda b: (0, 0, 0, 0)),      # qkv W
                pl.BlockSpec((3, H, 1, D), lambda b: (0, 0, 0, 0)),      # qkv b
                pl.BlockSpec((H, D, C_pad), lambda b: (0, 0, 0)),        # out W
                pl.BlockSpec((1, C_pad), lambda b: (0, 0)),              # out b
            ],
            out_specs=pl.BlockSpec((1, T, C_pad), lambda b: (b, 0, 0)),  # lane-dense
        ),
        compiler_params=pltpu.CompilerParams(
            dimension_semantics=("parallel",)),
    )(x_c, w_qkv, b_qkv, w_out_h, b_out_p)

    return out_padded[..., :C] if C_pad != C else out_padded


def _reference(x, w_attn, b_attn, w_out, b_out, n_head):
    """Plain-JAX reference mirroring the PyTorch forward (eval mode)."""
    B, T, C = x.shape
    D = C // n_head
    qkv = x @ w_attn + b_attn
    q, k, v = jnp.split(qkv, 3, axis=-1)
    q = q.reshape(B, T, n_head, D).transpose(0, 2, 1, 3)
    k = k.reshape(B, T, n_head, D).transpose(0, 2, 1, 3)
    v = v.reshape(B, T, n_head, D).transpose(0, 2, 1, 3)
    sims = (q @ jnp.swapaxes(k, -2, -1)) * (1.0 / math.sqrt(D))
    mask = jnp.tril(jnp.ones((T, T), dtype=bool))[None, None]
    sims = jnp.where(mask, sims, -jnp.inf)
    sims = jax.nn.softmax(sims, axis=-1)
    attn = sims @ v
    attn = attn.transpose(0, 2, 1, 3).reshape(B, T, C)
    return attn @ w_out + b_out


if __name__ == "__main__":
    n_embed = 32
    n_head = 4
    B, T = 2, 8

    key = jax.random.PRNGKey(0)
    kx, k1, k2, k3, k4 = jax.random.split(key, 5)

    bound = 1.0 / math.sqrt(n_embed)
    w_attn = jax.random.uniform(k1, (n_embed, 3 * n_embed), jnp.float32, -bound, bound)
    b_attn = jax.random.uniform(k2, (3 * n_embed,), jnp.float32, -bound, bound)
    w_out = jax.random.uniform(k3, (n_embed, n_embed), jnp.float32, -bound, bound)
    b_out = jax.random.uniform(k4, (n_embed,), jnp.float32, -bound, bound)
    x = jax.random.normal(kx, (B, T, n_embed), jnp.float32)

    ref = _reference(x, w_attn, b_attn, w_out, b_out, n_head)

    # f32 MXU path (tolerance covers the approximate EUP reciprocal).
    out_f32 = jax.block_until_ready(
        causal_self_attention(x, w_attn, b_attn, w_out, b_out, n_head,
                              compute_dtype=jnp.float32))
    assert out_f32.shape == (B, T, n_embed)
    assert jnp.allclose(out_f32, ref, atol=1e-2, rtol=1e-2), "f32 mismatch vs reference"

    # bf16 MXU path (v6e/v7x-oriented): matmul operands bf16, softmax/accum f32.
    out_bf16 = jax.block_until_ready(
        causal_self_attention(x, w_attn, b_attn, w_out, b_out, n_head,
                              compute_dtype=jnp.bfloat16))
    assert out_bf16.shape == (B, T, n_embed)
    assert jnp.allclose(out_bf16, ref, atol=5e-2, rtol=5e-2), "bf16 mismatch vs reference"

    print("KERNEL_OK")
</pallas_src>

<mosaic_0001>
module attributes {stable_mosaic.version = 11 : i64} {
  func.func @_attn_kernel(%arg0: i32, %arg1: memref<1x8x32xf32, #tpu.memory_space<vmem>>, %arg2: memref<3x4x32x8xf32, #tpu.memory_space<vmem>>, %arg3: memref<3x4x1x8xf32, #tpu.memory_space<vmem>>, %arg4: memref<4x8x128xf32, #tpu.memory_space<vmem>>, %arg5: memref<1x128xf32, #tpu.memory_space<vmem>>, %arg6: memref<1x8x128xf32, #tpu.memory_space<vmem>>) attributes {dimension_semantics = [#tpu.dimension_semantics<parallel>], iteration_bounds = array<i64: 2>, scalar_prefetch = 0 : i64, scratch_operands = 0 : i64, tpu.core_type = #tpu.core_type<tc>, window_params = [{transform_indices = @transform_0, window_bounds = array<i64: 1, 8, 32>}, {pipeline_mode = #tpu.pipeline_mode<synchronous>, transform_indices = @transform_1, window_bounds = array<i64: 3, 4, 32, 8>}, {pipeline_mode = #tpu.pipeline_mode<synchronous>, transform_indices = @transform_2, window_bounds = array<i64: 3, 4, 1, 8>}, {pipeline_mode = #tpu.pipeline_mode<synchronous>, transform_indices = @transform_3, window_bounds = array<i64: 4, 8, 128>}, {pipeline_mode = #tpu.pipeline_mode<synchronous>, transform_indices = @transform_4, window_bounds = array<i64: 1, 128>}, {transform_indices = @transform_5, window_bounds = array<i64: 1, 8, 128>}]} {
    %c0 = arith.constant 0 : index
    %c0_0 = arith.constant 0 : index
    %c0_1 = arith.constant 0 : index
    %0 = vector.load %arg1[%c0, %c0_0, %c0_1] : memref<1x8x32xf32, #tpu.memory_space<vmem>>, vector<1x8x32xf32>
    %1 = vector.shape_cast %0 : vector<1x8x32xf32> to vector<8x32xf32>
    %2 = vector.shape_cast %1 : vector<8x32xf32> to vector<1x8x32xf32>
    %3 = vector.shape_cast %2 : vector<1x8x32xf32> to vector<1x8x32xf32>
    %4 = vector.broadcast %3 : vector<1x8x32xf32> to vector<4x8x32xf32>
    %c0_2 = arith.constant 0 : index
    %c0_3 = arith.constant 0 : index
    %c0_4 = arith.constant 0 : index
    %c0_5 = arith.constant 0 : index
    %5 = vector.load %arg2[%c0_2, %c0_3, %c0_4, %c0_5] : memref<3x4x32x8xf32, #tpu.memory_space<vmem>>, vector<1x4x32x8xf32>
    %6 = vector.shape_cast %5 : vector<1x4x32x8xf32> to vector<4x32x8xf32>
    %c0_6 = arith.constant 0 : index
    %c0_7 = arith.constant 0 : index
    %c0_8 = arith.constant 0 : index
    %c0_9 = arith.constant 0 : index
    %7 = vector.load %arg3[%c0_6, %c0_7, %c0_8, %c0_9] : memref<3x4x1x8xf32, #tpu.memory_space<vmem>>, vector<1x4x1x8xf32>
    %8 = vector.shape_cast %7 : vector<1x4x1x8xf32> to vector<4x1x8xf32>
    "tpu.trace_start"() <{level = 10 : i32, message = "htc,hcd->htd"}> : () -> ()
    %cst = arith.constant dense<0.000000e+00> : vector<4x8x8xf32>
    %9 = tpu.matmul %4, %6, %cst {dimension_numbers = #tpu.dot_dimension_numbers<[2], [1], [1], [2], [0, 0, 0, 1, 1, 2], [0], [0]>} : vector<4x8x32xf32>, vector<4x32x8xf32>, vector<4x8x8xf32> -> vector<4x8x8xf32>
    "tpu.trace_stop"() : () -> ()
    %10 = vector.broadcast %8 : vector<4x1x8xf32> to vector<4x8x8xf32>
    %11 = arith.addf %9, %10 : vector<4x8x8xf32>
    %c1 = arith.constant 1 : index
    %c0_10 = arith.constant 0 : index
    %c0_11 = arith.constant 0 : index
    %c0_12 = arith.constant 0 : index
    %12 = vector.load %arg2[%c1, %c0_10, %c0_11, %c0_12] : memref<3x4x32x8xf32, #tpu.memory_space<vmem>>, vector<1x4x32x8xf32>
    %13 = vector.shape_cast %12 : vector<1x4x32x8xf32> to vector<4x32x8xf32>
    %c1_13 = arith.constant 1 : index
    %c0_14 = arith.constant 0 : index
    %c0_15 = arith.constant 0 : index
    %c0_16 = arith.constant 0 : index
    %14 = vector.load %arg3[%c1_13, %c0_14, %c0_15, %c0_16] : memref<3x4x1x8xf32, #tpu.memory_space<vmem>>, vector<1x4x1x8xf32>
    %15 = vector.shape_cast %14 : vector<1x4x1x8xf32> to vector<4x1x8xf32>
    "tpu.trace_start"() <{level = 10 : i32, message = "htc,hcd->htd"}> : () -> ()
    %cst_17 = arith.constant dense<0.000000e+00> : vector<4x8x8xf32>
    %16 = tpu.matmul %4, %13, %cst_17 {dimension_numbers = #tpu.dot_dimension_numbers<[2], [1], [1], [2], [0, 0, 0, 1, 1, 2], [0], [0]>} : vector<4x8x32xf32>, vector<4x32x8xf32>, vector<4x8x8xf32> -> vector<4x8x8xf32>
    "tpu.trace_stop"() : () -> ()
    %17 = vector.broadcast %15 : vector<4x1x8xf32> to vector<4x8x8xf32>
    %18 = arith.addf %16, %17 : vector<4x8x8xf32>
    %c2 = arith.constant 2 : index
    %c0_18 = arith.constant 0 : index
    %c0_19 = arith.constant 0 : index
    %c0_20 = arith.constant 0 : index
    %19 = vector.load %arg2[%c2, %c0_18, %c0_19, %c0_20] : memref<3x4x32x8xf32, #tpu.memory_space<vmem>>, vector<1x4x32x8xf32>
    %20 = vector.shape_cast %19 : vector<1x4x32x8xf32> to vector<4x32x8xf32>
    %c2_21 = arith.constant 2 : index
    %c0_22 = arith.constant 0 : index
    %c0_23 = arith.constant 0 : index
    %c0_24 = arith.constant 0 : index
    %21 = vector.load %arg3[%c2_21, %c0_22, %c0_23, %c0_24] : memref<3x4x1x8xf32, #tpu.memory_space<vmem>>, vector<1x4x1x8xf32>
    %22 = vector.shape_cast %21 : vector<1x4x1x8xf32> to vector<4x1x8xf32>
    "tpu.trace_start"() <{level = 10 : i32, message = "htc,hcd->htd"}> : () -> ()
    %cst_25 = arith.constant dense<0.000000e+00> : vector<4x8x8xf32>
    %23 = tpu.matmul %4, %20, %cst_25 {dimension_numbers = #tpu.dot_dimension_numbers<[2], [1], [1], [2], [0, 0, 0, 1, 1, 2], [0], [0]>} : vector<4x8x32xf32>, vector<4x32x8xf32>, vector<4x8x8xf32> -> vector<4x8x8xf32>
    "tpu.trace_stop"() : () -> ()
    %24 = vector.broadcast %22 : vector<4x1x8xf32> to vector<4x8x8xf32>
    %25 = arith.addf %23, %24 : vector<4x8x8xf32>
    %cst_26 = arith.constant 0.353553385 : f32
    %26 = vector.broadcast %cst_26 : f32 to vector<4x8x8xf32>
    %27 = arith.mulf %11, %26 : vector<4x8x8xf32>
    "tpu.trace_start"() <{level = 10 : i32, message = "hqd,hkd->hqk"}> : () -> ()
    %cst_27 = arith.constant dense<0.000000e+00> : vector<4x8x8xf32>
    %28 = tpu.matmul %27, %18, %cst_27 {dimension_numbers = #tpu.dot_dimension_numbers<[2], [2], [1], [1], [0, 0, 0, 1, 1, 1], [0], [0]>} : vector<4x8x8xf32>, vector<4x8x8xf32>, vector<4x8x8xf32> -> vector<4x8x8xf32>
    "tpu.trace_stop"() : () -> ()
    %29 = tpu.iota {dimensions = array<i32: 0>} : vector<8x8xi32>
    %30 = tpu.iota {dimensions = array<i32: 1>} : vector<8x8xi32>
    %31 = arith.cmpi sge, %29, %30 : vector<8x8xi32>
    %cst_28 = arith.constant 0.000000e+00 : f32
    %cst_29 = arith.constant -1.000000e+30 : f32
    %32 = vector.broadcast %cst_28 : f32 to vector<8x8xf32>
    %33 = vector.broadcast %cst_29 : f32 to vector<8x8xf32>
    %34 = arith.select %31, %32, %33 : vector<8x8xi1>, vector<8x8xf32>
    %35 = vector.shape_cast %34 : vector<8x8xf32> to vector<1x8x8xf32>
    %36 = vector.broadcast %35 : vector<1x8x8xf32> to vector<4x8x8xf32>
    %37 = arith.addf %28, %36 : vector<4x8x8xf32>
    %cst_30 = arith.constant dense<0xFF800000> : vector<4x8xf32>
    %38 = vector.multi_reduction <maximumf>, %37, %cst_30 [2] : vector<4x8x8xf32> to vector<4x8xf32>
    %39 = vector.shape_cast %38 : vector<4x8xf32> to vector<4x8x1xf32>
    %40 = vector.broadcast %39 : vector<4x8x1xf32> to vector<4x8x8xf32>
    %41 = arith.subf %37, %40 : vector<4x8x8xf32>
    %42 = math.exp %41 : vector<4x8x8xf32>
    %cst_31 = arith.constant dense<0.000000e+00> : vector<4x8xf32>
    %43 = vector.multi_reduction <add>, %42, %cst_31 [2] : vector<4x8x8xf32> to vector<4x8xf32>
    %44 = vector.shape_cast %43 : vector<4x8xf32> to vector<4x8x1xf32>
    "tpu.trace_start"() <{level = 10 : i32, message = "hqk,hkd->hqd"}> : () -> ()
    %cst_32 = arith.constant dense<0.000000e+00> : vector<4x8x8xf32>
    %45 = tpu.matmul %42, %25, %cst_32 {dimension_numbers = #tpu.dot_dimension_numbers<[2], [1], [1], [2], [0, 0, 0, 1, 1, 2], [0], [0]>} : vector<4x8x8xf32>, vector<4x8x8xf32>, vector<4x8x8xf32> -> vector<4x8x8xf32>
    "tpu.trace_stop"() : () -> ()
    %46 = tpu.reciprocal %44 {approx = true} : vector<4x8x1xf32> -> vector<4x8x1xf32>
    %47 = vector.broadcast %46 : vector<4x8x1xf32> to vector<4x8x8xf32>
    %48 = arith.mulf %45, %47 : vector<4x8x8xf32>
    %c0_33 = arith.constant 0 : index
    %c0_34 = arith.constant 0 : index
    %c0_35 = arith.constant 0 : index
    %49 = vector.load %arg4[%c0_33, %c0_34, %c0_35] : memref<4x8x128xf32, #tpu.memory_space<vmem>>, vector<4x8x128xf32>
    "tpu.trace_start"() <{level = 10 : i32, message = "htd,hdc->htc"}> : () -> ()
    %cst_36 = arith.constant dense<0.000000e+00> : vector<4x8x128xf32>
    %50 = tpu.matmul %48, %49, %cst_36 {dimension_numbers = #tpu.dot_dimension_numbers<[2], [1], [1], [2], [0, 0, 0, 1, 1, 2], [0], [0]>} : vector<4x8x8xf32>, vector<4x8x128xf32>, vector<4x8x128xf32> -> vector<4x8x128xf32>
    "tpu.trace_stop"() : () -> ()
    %cst_37 = arith.constant dense<0.000000e+00> : vector<8x128xf32>
    %51 = vector.multi_reduction <add>, %50, %cst_37 [0] : vector<4x8x128xf32> to vector<8x128xf32>
    %c0_38 = arith.constant 0 : index
    %c0_39 = arith.constant 0 : index
    %52 = vector.load %arg5[%c0_38, %c0_39] : memref<1x128xf32, #tpu.memory_space<vmem>>, vector<1x128xf32>
    %53 = vector.broadcast %52 : vector<1x128xf32> to vector<8x128xf32>
    %54 = arith.addf %51, %53 : vector<8x128xf32>
    %c0_40 = arith.constant 0 : index
    %c0_41 = arith.constant 0 : index
    %c0_42 = arith.constant 0 : index
    %55 = vector.load %arg6[%c0_40, %c0_41, %c0_42] : memref<1x8x128xf32, #tpu.memory_space<vmem>>, vector<1x8x128xf32>
    %56 = vector.shape_cast %55 : vector<1x8x128xf32> to vector<8x128xf32>
    %57 = vector.shape_cast %54 : vector<8x128xf32> to vector<1x8x128xf32>
    tpu.vector_store %arg6[%c0_40, %c0_41, %c0_42], %57 {strides = array<i32>} : memref<1x8x128xf32, #tpu.memory_space<vmem>>, vector<1x8x128xf32>,
    return
  }
  func.func @transform_0(%arg0: i32) -> (i32, i32, i32) {
    %c0_i32 = arith.constant 0 : i32
    %c0_i32_0 = arith.constant 0 : i32
    %c0_i32_1 = arith.constant 0 : i32
    return %arg0, %c0_i32, %c0_i32_0 : i32, i32, i32
  }
  func.func @transform_1(%arg0: i32) -> (i32, i32, i32, i32) {
    %c0_i32 = arith.constant 0 : i32
    %c0_i32_0 = arith.constant 0 : i32
    %c0_i32_1 = arith.constant 0 : i32
    %c0_i32_2 = arith.constant 0 : i32
    %c0_i32_3 = arith.constant 0 : i32
    return %c0_i32, %c0_i32_0, %c0_i32_1, %c0_i32_2 : i32, i32, i32, i32
  }
  func.func @transform_2(%arg0: i32) -> (i32, i32, i32, i32) {
    %c0_i32 = arith.constant 0 : i32
    %c0_i32_0 = arith.constant 0 : i32
    %c0_i32_1 = arith.constant 0 : i32
    %c0_i32_2 = arith.constant 0 : i32
    %c0_i32_3 = arith.constant 0 : i32
    return %c0_i32, %c0_i32_0, %c0_i32_1, %c0_i32_2 : i32, i32, i32, i32
  }
  func.func @transform_3(%arg0: i32) -> (i32, i32, i32) {
    %c0_i32 = arith.constant 0 : i32
    %c0_i32_0 = arith.constant 0 : i32
    %c0_i32_1 = arith.constant 0 : i32
    %c0_i32_2 = arith.constant 0 : i32
    return %c0_i32, %c0_i32_0, %c0_i32_1 : i32, i32, i32
  }
  func.func @transform_4(%arg0: i32) -> (i32, i32) {
    %c0_i32 = arith.constant 0 : i32
    %c0_i32_0 = arith.constant 0 : i32
    %c0_i32_1 = arith.constant 0 : i32
    return %c0_i32, %c0_i32_0 : i32, i32
  }
  func.func @transform_5(%arg0: i32) -> (i32, i32, i32) {
    %c0_i32 = arith.constant 0 : i32
    %c0_i32_0 = arith.constant 0 : i32
    %c0_i32_1 = arith.constant 0 : i32
    return %arg0, %c0_i32, %c0_i32_0 : i32, i32, i32
  }
}

</mosaic_0001>

<bundles_post_ra>
// kernel: tpu_custom_call.1
= control target key start
LH: loop header
LB: loop body
LE: loop exit
PB: predicated region body
PF: predicated region fallthrough
CT: control target
= control target key end

     0   :  { %10 = vsyncpa [#allocation3], 0  ;;  %s3259_s0 = inlined_call_operand.vmem [shape: f32[2,8,32], index: 0, kind: input, shape index: {}]   ;;  %s3260_s1 = inlined_call_operand.vmem [shape: f32[3,4,32,8], index: 1, kind: input, shape index: {}]   ;;  %s3261_s2 = inlined_call_operand.vmem [shape: f32[3,4,1,8], index: 2, kind: input, shape index: {}]   ;;  %s3262_s3 = inlined_call_operand.vmem [shape: f32[4,8,128], index: 3, kind: input, shape index: {}]   ;;  %s3263_s4 = inlined_call_operand.vmem [shape: f32[1,128], index: 4, kind: input, shape index: {}]   ;;  %s3264_s5 = inlined_call_operand.hbm [shape: f32[2,8,128], index: 5, kind: output, shape index: {}]  }
   0x1   :  { %12 = vsyncpa [#allocation3 + $0x1], 0  ;;  %s2830_s18 = smov 0   ;;  %s2832_s19 = smov 0  }
   0x2   :  { %s2834_s20 = smov 0   ;;  %s2836_s21 = smov 0  }
   0x3 LB: > { %s2851_s22 = sadd.s32 4294967295, %s2793_s21   ;;  %s2233_s23 = sadd.s32 4294967294, %s2793_s21   ;;  %s2793_s21 = sphi %s2836_s21, %s3270_s21   ;;  %s2789_s20 = sphi %s2834_s20, %s3269_s20   ;;  %s2785_s19 = sphi %s2832_s19, %s3268_s19   ;;  %s2781_s18 = sphi %s2830_s18, %s3267_s18  }
   0x4   : > { %s2855_s24 = sadd.s32 1, %s2793_s21   ;;  %s135_s25 = sadd.s32 1, %s2789_s20 }
   0x5   : > { %s132_s26 = ssub.s32 %s2793_s21, %s2855_s24  ;;  %p145_p0 = scmp.ne.s32.totalorder %s2789_s20, %s2785_s19 }
   0x6   : > { %p133_p1 = scmp.eq.s32.totalorder %s132_s26, 0  ;;  %p146_p2 = scmp.eq.s32.totalorder %s2851_s22, 1 }
   0x7   : > { %p151_p3 = scmp.ne.s32.totalorder %s2785_s19, %s2781_s18  ;;  %p152_p4 = scmp.eq.s32.totalorder %s2233_s23, 1 }
   0x8   : > { %s2866_s27 = scalar_select %p133_p1, %s2789_s20, %s135_s25  }
   0x9   : > { %p2868_p5 = por %p146_p2, %p145_p0  ;;  %p2872_p6 = por %p152_p4, %p151_p3 }
   0xa   : > { %p2236_p7 = scmp.ge.s32.totalorder %s2793_s21, 1  ;;  %p189_p8 = scmp.lt.s32.totalorder %s2793_s21, 3 }
   0xc   : > { %p190_p9 = pnand %p2236_p7, %p189_p8 }
   0xd   : > { %v221_v0 = vld [vmem:[%s3260_s1] sm:$0xff] (!%p190_p9)  ;;  %v222_v1 = vld [vmem:[%s3260_s1 + $0x8] sm:$0xff] (!%p190_p9)  ;;  %v2795_v3 = vmov (!%p190_p9), 0.0|0.0   ;;  %v223_v6 = vld [vmem:[%s3260_s1 + $0x10] sm:$0xff] (!%p190_p9)  ;;  %p216_p10 = scmp.lt.s32.totalorder (!%p190_p9), %s2851_s22, 1  ;;  %vm2796_vm0 = vmmov (!%p190_p9), 0  }
   0xe   : > { %193 = sbr.rel (%p190_p9) target bundleno = 1087 (0x43f), region = 40  ;;  %v225_v2 = vld [vmem:[%s3260_s1 + $0x20] sm:$0xff] (!%p190_p9)  ;;  %2600 = vmatprep.subr.bf16.mxu0 (!%p190_p9), %v2795_v3  ;;  %2606 = vmatprep.subr.bf16.mxu1 (!%p190_p9), %v2795_v3  ;;  %v2601_v4 = vpack.c.bf16 (!%p190_p9), %v222_v1, %v221_v0  ;;  %v226_v5 = vld [vmem:[%s3260_s1 + $0x28] sm:$0xff] (!%p190_p9)  ;;  %v224_v7 = vld [vmem:[%s3260_s1 + $0x18] sm:$0xff] (!%p190_p9)  ;;  %v2797_v11 = vmov (!%p190_p9), 0.0   ;;  %vm265_vm1 = vcmask (!%p190_p9), 261120  }
   0xf   : > { %v2607_v8 = vpack.c.bf16 (!%p190_p9), %v226_v5, %v225_v2  ;;  %v227_v9 = vld [vmem:[%s3260_s1 + $0x30] sm:$0xff] (!%p190_p9)  ;;  %v228_v10 = vld [vmem:[%s3260_s1 + $0x38] sm:$0xff] (!%p190_p9)  ;;  %2416 = vmatprep.mubr.msk.f32.mxu0 (!%p190_p9), %vm2796_vm0, %v2797_v11  ;;  %2427 = vmatprep.mubr.msk.f32.mxu1 (!%p190_p9), %vm2796_vm0, %v2797_v11  ;;  %v2604_v12 = vpack.c.bf16 (!%p190_p9), %v224_v7, %v223_v6  ;;  %v229_v14 = vld [vmem:[%s3260_s1 + $0x40] sm:$0xff] (!%p190_p9)  ;;  %vm1211_vm2 = vcmask (!%p190_p9), 64512   ;;  %s2321_s14 = sshll.u32 (!%p190_p9), %s2851_s22, 7 }
  0x10   : > { %2602 = vmatpush3.bf16.msra.mxu0 (!%p190_p9), %v2601_v4  ;;  %v2610_v13 = vpack.c.bf16 (!%p190_p9), %v228_v10, %v227_v9  ;;  %v230_v15 = vld [vmem:[%s3260_s1 + $0x48] sm:$0xff] (!%p190_p9)  ;;  %v233_v16 = vld [vmem:[%s3260_s1 + $0x60] sm:$0xff] (!%p190_p9)  ;;  %v231_v21 = vld [vmem:[%s3260_s1 + $0x50] sm:$0xff] (!%p190_p9)  ;;  %s3217_s25 = scalar_lea.hbm (!%p190_p9), %s3264_s5, %s2321_s14 }
  0x11   : > { %2608 = vmatpush3.bf16.msra.mxu1 (!%p190_p9), %v2607_v8  ;;  %2603 = vmatprep.subr.bf16.mxu0 (!%p190_p9), %v2795_v3  ;;  %v234_v17 = vld [vmem:[%s3260_s1 + $0x68] sm:$0xff] (!%p190_p9)  ;;  %v2613_v19 = vpack.c.bf16 (!%p190_p9), %v230_v15, %v229_v14  ;;  %v232_v22 = vld [vmem:[%s3260_s1 + $0x58] sm:$0xff] (!%p190_p9)  ;;  %v235_v23 = vld [vmem:[%s3260_s1 + $0x70] sm:$0xff] (!%p190_p9) }
  0x12   : > { %2609 = vmatprep.subr.bf16.mxu1 (!%p190_p9), %v2795_v3  ;;  %v2619_v20 = vpack.c.bf16 (!%p190_p9), %v234_v17, %v233_v16  ;;  %v236_v24 = vld [vmem:[%s3260_s1 + $0x78] sm:$0xff] (!%p190_p9)  ;;  %v2616_v25 = vpack.c.bf16 (!%p190_p9), %v232_v22, %v231_v21  ;;  %v2247_v27 = vld [vmem:[%s3260_s1 + $0x80] sm:$0xff] (!%p190_p9)  ;;  %v2248_v28 = vld [vmem:[%s3260_s1 + $0x88] sm:$0xff] (!%p190_p9) }
  0x13   : > { %v2622_v26 = vpack.c.bf16 (!%p190_p9), %v236_v24, %v235_v23  ;;  %v2251_v29 = vld [vmem:[%s3260_s1 + $0xa0] sm:$0xff] (!%p190_p9)  ;;  %v2252_v30 = vld [vmem:[%s3260_s1 + $0xa8] sm:$0xff] (!%p190_p9)  ;;  %v2625_v31 = vpack.c.bf16 (!%p190_p9), %v2248_v28, %v2247_v27  ;;  %v2249_v33 = vld [vmem:[%s3260_s1 + $0x90] sm:$0xff] (!%p190_p9) }
  0x14   : > { %2605 = vmatpush3.bf16.msra.mxu0 (!%p190_p9), %v2604_v12  ;;  %v2631_v32 = vpack.c.bf16 (!%p190_p9), %v2252_v30, %v2251_v29  ;;  %v2250_v34 = vld [vmem:[%s3260_s1 + $0x98] sm:$0xff] (!%p190_p9)  ;;  %v2253_v35 = vld [vmem:[%s3260_s1 + $0xb0] sm:$0xff] (!%p190_p9)  ;;  %v2255_v39 = vld [vmem:[%s3260_s1 + $0xc0] sm:$0xff] (!%p190_p9) }
  0x15   : > { %s217_s30 = scalar_select %p216_p10, %s2851_s22, 1  ;;  %2611 = vmatpush3.bf16.msra.mxu1 %v2610_v13  ;;  %2612 = vmatprep.subr.bf16.mxu0 %v2795_v3  ;;  %v2254_v36 = vld [vmem:[%s3260_s1 + $0xb8] sm:$0xff]  ;;  %v2628_v37 = vpack.c.bf16 %v2250_v34, %v2249_v33  ;;  %v2256_v40 = vld [vmem:[%s3260_s1 + $0xc8] sm:$0xff]  ;;  %v2259_v41 = vld [vmem:[%s3260_s1 + $0xe0] sm:$0xff] }
  0x16   : > { %2618 = vmatprep.subr.bf16.mxu1 %v2795_v3  ;;  %v2634_v38 = vpack.c.bf16 %v2254_v36, %v2253_v35  ;;  %v2260_v42 = vld [vmem:[%s3260_s1 + $0xe8] sm:$0xff]  ;;  %v2637_v43 = vpack.c.bf16 %v2256_v40, %v2255_v39  ;;  %v2257_v45 = vld [vmem:[%s3260_s1 + $0xd0] sm:$0xff]  ;;  %v2258_v46 = vld [vmem:[%s3260_s1 + $0xd8] sm:$0xff]  ;;  %s2799_s22 = smov [#allocation2]  }
  0x17   : > { %s2238_s10 = sshll.u32 %s217_s30, 3  ;;  %v2643_v44 = vpack.c.bf16 %v2260_v42, %v2259_v41  ;;  %v2261_v47 = vld [vmem:[%s3260_s1 + $0xf0] sm:$0xff]  ;;  %v2262_v48 = vld [vmem:[%s3260_s1 + $0xf8] sm:$0xff]  ;;  %v2640_v49 = vpack.c.bf16 %v2258_v46, %v2257_v45  ;;  %v2275_v51 = vld [vmem:[%s3260_s1 + $0x100] sm:$0xff]  ;;  %s2735_s6 = sshll.u32 %s2799_s22, 4  ;;  %s2736_s6 = int_to_ptr.vmem [resolvable:$false] %s2735_s6 }
  0x18   : > { %s219_s17 = scalar_lea.vmem %s3259_s0, %s2238_s10  ;;  %v2646_v50 = vpack.c.bf16 %v2262_v48, %v2261_v47  ;;  %v2276_v52 = vld [vmem:[%s3260_s1 + $0x108] sm:$0xff]  ;;  %v2279_v53 = vld [vmem:[%s3260_s1 + $0x120] sm:$0xff]  ;;  %v2277_v57 = vld [vmem:[%s3260_s1 + $0x110] sm:$0xff]  ;;  %s213_s10 = sand.u32 1, %s2785_s19  }
  0x19   : > { %v2927_v18 = vld [vmem:[%s219_s17] sm:$0xff]  ;;  %v2280_v54 = vld [vmem:[%s3260_s1 + $0x128] sm:$0xff]  ;;  %v2649_v55 = vpack.c.bf16 %v2276_v52, %v2275_v51  ;;  %v2278_v58 = vld [vmem:[%s3260_s1 + $0x118] sm:$0xff]  ;;  %s2237_s11 = sshll.u32 %s213_s10, 3  ;;  %s2161_s26 = scalar_lea.sflag [#allocation3], %s213_s10 }
  0x1a   : > { %2417 = vmatmul.mubr.msk.f32.vlgmr.msra.gmra.mrb[0].mxu0 %vm265_vm1, %v2927_v18  ;;  %2428 = vmatmul.mubr.msk.f32.vlgmr.msra.gmra.mrb[0].mxu1 %vm265_vm1, %v2927_v18  ;;  %v2655_v56 = vpack.c.bf16 %v2280_v54, %v2279_v53  ;;  %v2281_v59 = vld [vmem:[%s3260_s1 + $0x130] sm:$0xff]  ;;  %v2652_v60 = vpack.c.bf16 %v2278_v58, %v2277_v57  ;;  %v2282_v61 = vld [vmem:[%s3260_s1 + $0x138] sm:$0xff]  ;;  %v2283_v63 = vld [vmem:[%s3260_s1 + $0x140] sm:$0xff]  ;;  %s215_s15 = scalar_lea.vmem [#allocation2], %s2237_s11  ;;  %s2737_s7 = scalar_lea.vmem %s2736_s6, 256 }
  0x1b   : > { %2614 = vmatpush3.bf16.msra.mxu0 %v2613_v19  ;;  %2620 = vmatpush3.bf16.msra.mxu1 %v2619_v20  ;;  %v2658_v62 = vpack.c.bf16 %v2282_v61, %v2281_v59  ;;  %v2284_v0 = vld [vmem:[%s3260_s1 + $0x148] sm:$0xff]  ;;  %v2287_v1 = vld [vmem:[%s3260_s1 + $0x160] sm:$0xff]  ;;  %v2285_v6 = vld [vmem:[%s3260_s1 + $0x150] sm:$0xff]  ;;  %s2174_s16 = sshll.u32 %s215_s15, 4  ;;  %s3219_s16 = int_to_ptr.vmem [resolvable:$true] %s2174_s16 }
  0x1c   : > { %2615 = vmatprep.subr.bf16.mxu0 %v2795_v3  ;;  %2621 = vmatprep.subr.bf16.mxu1 %v2795_v3  ;;  %v2661_v2 = vpack.c.bf16 %v2284_v0, %v2283_v63  ;;  %v2288_v4 = vld [vmem:[%s3260_s1 + $0x168] sm:$0xff]  ;;  %v2286_v7 = vld [vmem:[%s3260_s1 + $0x158] sm:$0xff]  ;;  %v2289_v8 = vld [vmem:[%s3260_s1 + $0x170] sm:$0xff]  ;;  %v2798_v63 = vmov -1e+30   ;;  %s2731_s30 = scalar_lea.vmem %s3219_s16, 128  ;;  %p2738_p0 = scmp.lt.s32.totalorder %s3219_s16, %s2736_s6 }
  0x1d   : > { %2438 = vmatprep.mubr.msk.f32.mxu0 %vm2796_vm0, %v2797_v11  ;;  %2449 = vmatprep.mubr.msk.f32.mxu1 %vm2796_vm0, %v2797_v11  ;;  %v2667_v5 = vpack.c.bf16 %v2288_v4, %v2287_v1  ;;  %v2664_v9 = vpack.c.bf16 %v2286_v7, %v2285_v6  ;;  %v2290_v10 = vld [vmem:[%s3260_s1 + $0x178] sm:$0xff]  ;;  %v2239_v21 = vld [vmem:[%s3261_s2] ss:$0 sm:$0xff]  ;;  %v2267_v22 = vld [vmem:[%s3261_s2 + $0x4] ss:$0 sm:$0xff]  ;;  %p2732_p11 = scmp.ne.s32.totalorder %s3219_s16, %s2731_s30  ;;  %p2739_p1 = scmp.lt.s32.totalorder %s2737_s7, %s2731_s30 }
  0x1e   : > { %v2670_v12 = vpack.c.bf16 %v2290_v10, %v2289_v8  ;;  %v2268_v23 = vld [vmem:[%s3261_s2 + $0x5] ss:$0 sm:$0xff]  ;;  %v2241_v34 = vld [vmem:[%s3261_s2 + $0x2] ss:$0 sm:$0xff]  ;;  %v2242_v35 = vld [vmem:[%s3261_s2 + $0x3] ss:$0 sm:$0xff] }
  0x1f   : > { %2617 = vmatpush3.bf16.msra.mxu0 %v2616_v25  ;;  %2623 = vmatpush3.bf16.msra.mxu1 %v2622_v26  ;;  %v2269_v36 = vld [vmem:[%s3261_s2 + $0x6] ss:$0 sm:$0xff]  ;;  %v2295_v48 = vld [vmem:[%s3261_s2 + $0x8] ss:$0 sm:$0xff]  ;;  %p2733_p12 = pnand %p2732_p11, %p2868_p5  ;;  %p2740_p2 = por %p2739_p1, %p2738_p0 }
  0x20   : > { %2624 = vmatprep.subr.bf16.mxu0 %v2795_v3  ;;  %2630 = vmatprep.subr.bf16.mxu1 %v2795_v3 }
  0x21   : > { %p2734_p13 = pneg %p2733_p12 }
  0x22   : > { %2439 = vmatmul.mubr.msk.f32.vlgmr.msra.gmra.mrb[2].mxu0 %vm265_vm1, %v2927_v18  ;;  %2450 = vmatmul.mubr.msk.f32.vlgmr.msra.gmra.mrb[2].mxu1 %vm265_vm1, %v2927_v18 }
  0x23   : > { %2626 = vmatpush3.bf16.msra.mxu0 %v2625_v31  ;;  %2632 = vmatpush3.bf16.msra.mxu1 %v2631_v32  ;;  %p2741_p3 = pnand %p2740_p2, %p2734_p13 }
  0x24   : > { %2627 = vmatprep.subr.bf16.mxu0 %v2795_v3  ;;  %2633 = vmatprep.subr.bf16.mxu1 %v2795_v3 }
  0x25   : > { %2460 = vmatprep.mubr.msk.f32.mxu0 %vm2796_vm0, %v2797_v11  ;;  %2471 = vmatprep.mubr.msk.f32.mxu1 %vm2796_vm0, %v2797_v11 }
  0x27   : > { %2629 = vmatpush3.bf16.msra.mxu0 %v2628_v37  ;;  %2635 = vmatpush3.bf16.msra.mxu1 %v2634_v38  ;;  %v2270_v37 = vld [vmem:[%s3261_s2 + $0x7] ss:$0 sm:$0xff] }
  0x28   : > { %2636 = vmatprep.subr.bf16.mxu0 %v2795_v3  ;;  %2642 = vmatprep.subr.bf16.mxu1 %v2795_v3 }
  0x2a   : > { %2461 = vmatmul.mubr.msk.f32.vlgmr.msra.gmra.mrb[4].mxu0 %vm265_vm1, %v2927_v18  ;;  %2472 = vmatmul.mubr.msk.f32.vlgmr.msra.gmra.mrb[4].mxu1 %vm265_vm1, %v2927_v18 }
  0x2b   : > { %2638 = vmatpush3.bf16.msra.mxu0 %v2637_v43  ;;  %2644 = vmatpush3.bf16.msra.mxu1 %v2643_v44 }
  0x2c   : > { %2639 = vmatprep.subr.bf16.mxu0 %v2795_v3  ;;  %2645 = vmatprep.subr.bf16.mxu1 %v2795_v3 }
  0x2d   : > { %2482 = vmatprep.mubr.msk.f32.mxu0 %vm2796_vm0, %v2797_v11  ;;  %2493 = vmatprep.mubr.msk.f32.mxu1 %vm2796_vm0, %v2797_v11 }
  0x2f   : > { %2641 = vmatpush3.bf16.msra.mxu0 %v2640_v49  ;;  %2647 = vmatpush3.bf16.msra.mxu1 %v2646_v50  ;;  %v2296_v49 = vld [vmem:[%s3261_s2 + $0x9] ss:$0 sm:$0xff] }
  0x30   : > { %2648 = vmatprep.subr.bf16.mxu0 %v2795_v3  ;;  %2654 = vmatprep.subr.bf16.mxu1 %v2795_v3 }
  0x32   : > { %2483 = vmatmul.mubr.msk.f32.vlgmr.msra.gmra.mrb[6].mxu0 %vm265_vm1, %v2927_v18  ;;  %2494 = vmatmul.mubr.msk.f32.vlgmr.msra.gmra.mrb[6].mxu1 %vm265_vm1, %v2927_v18 }
  0x33   : > { %2650 = vmatpush3.bf16.msra.mxu0 %v2649_v55  ;;  %2656 = vmatpush3.bf16.msra.mxu1 %v2655_v56 }
  0x34   : > { %2651 = vmatprep.subr.bf16.mxu0 %v2795_v3  ;;  %2657 = vmatprep.subr.bf16.mxu1 %v2795_v3 }
  0x35   : > { %2504 = vmatprep.mubr.msk.f32.mxu0 %vm2796_vm0, %v2797_v11  ;;  %2515 = vmatprep.mubr.msk.f32.mxu1 %vm2796_vm0, %v2797_v11 }
  0x37   : > { %2653 = vmatpush3.bf16.msra.mxu0 %v2652_v60  ;;  %2659 = vmatpush3.bf16.msra.mxu1 %v2658_v62  ;;  %v1205_v60 = vlaneseq }
  0x38   : > { %2660 = vmatprep.subr.bf16.mxu0 %v2795_v3  ;;  %2666 = vmatprep.subr.bf16.mxu1 %v2795_v3 }
  0x39   : > { %v1206_v61 = vshrl.u32 %v1205_v60, 7  ;;  %v1208_v62 = vand.u32 127, %v1205_v60 }
  0x3a   : > { %2505 = vmatmul.mubr.msk.f32.vlgmr.msra.gmra.mrb[8].mxu0 %vm265_vm1, %v2927_v18  ;;  %2516 = vmatmul.mubr.msk.f32.vlgmr.msra.gmra.mrb[8].mxu1 %vm265_vm1, %v2927_v18 }
  0x3b   : > { %2662 = vmatpush3.bf16.msra.mxu0 %v2661_v2  ;;  %2668 = vmatpush3.bf16.msra.mxu1 %v2667_v5  ;;  %vm1209_vm3 = vcmp.ge.s32.totalorder %v1206_v61, %v1208_v62 }
  0x3c   : > { %2663 = vmatprep.subr.bf16.mxu0 %v2795_v3  ;;  %2669 = vmatprep.subr.bf16.mxu1 %v2795_v3  ;;  %v1210_v0 = vsel %vm1209_vm3, 0.0, %v2798_v63 }
  0x3d   : > { %2526 = vmatprep.mubr.msk.f32.mxu0 %vm2796_vm0, %v2797_v11  ;;  %2537 = vmatprep.mubr.msk.f32.mxu1 %vm2796_vm0, %v2797_v11 }
  0x3f   : > { %2665 = vmatpush3.bf16.msra.mxu0 %v2664_v9  ;;  %2671 = vmatpush3.bf16.msra.mxu1 %v2670_v12 }
  0x40   : > { %2540 = vmatprep.subr.mxu0 %v2797_v11  ;;  %2545 = vmatprep.subr.mxu1 %v2797_v11 }
  0x42   : > { %2527 = vmatmul.mubr.msk.f32.vlgmr.msra.gmra.mrb[10].mxu0 %vm265_vm1, %v2927_v18  ;;  %2538 = vmatmul.mubr.msk.f32.vlgmr.msra.gmra.mrb[10].mxu1 %vm265_vm1, %v2927_v18  ;;  %v2240_v18 = vld [vmem:[%s3261_s2 + $0x1] ss:$0 sm:$0xff] }
  0x43   : > { %2542 = vmatprep.mubr.msk.f32.mxu0 %vm2796_vm0, %v2797_v11  ;;  %2547 = vmatprep.mubr.msk.f32.mxu1 %vm2796_vm0, %v2797_v11 }
  0xed   : > { %v335_v3 = vpop.f32.mrb[0].mxu0  ;;  %v405_v14 = vpop.f32.mrb[0].mxu1 }
  0xee   : > { %v2418_v13 = vpop.f32.mrb[1].mxu0  ;;  %v2429_v15 = vpop.f32.mrb[1].mxu1  ;;  %v336_v24 = vadd.f32 %v2239_v21, %v335_v3  ;;  %v406_v26 = vadd.f32 %v2240_v18, %v405_v14 }
  0xf0   : > { %v1201_v32 = vmul.f32 0.35355338, %v336_v24  ;;  %v1202_v33 = vmul.f32 0.35355338, %v406_v26 }
  0xf5   : > { %v475_v16 = vpop.f32.mrb[2].mxu0  ;;  %v545_v19 = vpop.f32.mrb[2].mxu1 }
  0xf6   : > { %v2440_v17 = vpop.f32.mrb[3].mxu0  ;;  %v2451_v20 = vpop.f32.mrb[3].mxu1  ;;  %v476_v38 = vadd.f32 %v2241_v34, %v475_v16  ;;  %v546_v40 = vadd.f32 %v2242_v35, %v545_v19 }
  0xf8   : > { %v1203_v46 = vmul.f32 0.35355338, %v476_v38  ;;  %v1204_v47 = vmul.f32 0.35355338, %v546_v40 }
  0xfd   : > { %v661_v25 = vpop.f32.mrb[4].mxu0  ;;  %v731_v28 = vpop.f32.mrb[4].mxu1 }
  0xfe   : > { %v662_v27 = vadd.f32 %v2267_v22, %v661_v25  ;;  %v2462_v29 = vpop.f32.mrb[5].mxu0  ;;  %v732_v30 = vadd.f32 %v2268_v23, %v731_v28  ;;  %v2473_v31 = vpop.f32.mrb[5].mxu1 }
 0x100   : > { %2541 = vmatpush3.xpose.msk.msra.mxu0 %vm1211_vm2, %v662_v27  ;;  %2546 = vmatpush3.xpose.msk.msra.mxu1 %vm1211_vm2, %v732_v30  ;;  %v2297_v27 = vld [vmem:[%s3261_s2 + $0xa] ss:$0 sm:$0xff] }
 0x101   : > { %2550 = vmatprep.subr.mxu0 %v2797_v11  ;;  %2555 = vmatprep.subr.mxu1 %v2797_v11 }
 0x103   : > { %2543 = vmatmul.mubr.msk.f32.vlgmr.msra.gmra.mrb[12].mxu0 %vm1211_vm2, %v1201_v32  ;;  %2548 = vmatmul.mubr.msk.f32.vlgmr.msra.gmra.mrb[12].mxu1 %vm1211_vm2, %v1202_v33  ;;  %v2298_v33 = vld [vmem:[%s3261_s2 + $0xb] ss:$0 sm:$0xff] }
 0x104   : > { %2552 = vmatprep.mubr.msk.f32.mxu0 %vm2796_vm0, %v2797_v11  ;;  %2557 = vmatprep.mubr.msk.f32.mxu1 %vm2796_vm0, %v2797_v11 }
 0x105   : > { %v801_v39 = vpop.f32.mrb[6].mxu0  ;;  %v871_v42 = vpop.f32.mrb[6].mxu1 }
 0x106   : > { %v802_v41 = vadd.f32 %v2269_v36, %v801_v39  ;;  %v2484_v43 = vpop.f32.mrb[7].mxu0  ;;  %v872_v44 = vadd.f32 %v2270_v37, %v871_v42  ;;  %v2495_v45 = vpop.f32.mrb[7].mxu1  ;;  %v1852_v42 = vld [vmem:[%s3262_s3] sm:$0xff] }
 0x107   : > { %v1853_v43 = vld [vmem:[%s3262_s3 + $0x8] sm:$0xff] }
 0x108   : > { %2551 = vmatpush3.xpose.msk.msra.mxu0 %vm1211_vm2, %v802_v41  ;;  %2556 = vmatpush3.xpose.msk.msra.mxu1 %vm1211_vm2, %v872_v44 }
 0x109   : > { %2560 = vmatprep.subr.mxu0 %v2797_v11  ;;  %2565 = vmatprep.subr.mxu1 %v2797_v11 }
 0x10b   : > { %2553 = vmatmul.mubr.msk.f32.vlgmr.msra.gmra.mrb[14].mxu0 %vm1211_vm2, %v1203_v46  ;;  %2558 = vmatmul.mubr.msk.f32.vlgmr.msra.gmra.mrb[14].mxu1 %vm1211_vm2, %v1204_v47 }
 0x10c   : > { %2562 = vmatprep.mubr.msk.f32.mxu0 %vm2796_vm0, %v2797_v11  ;;  %2567 = vmatprep.mubr.msk.f32.mxu1 %vm2796_vm0, %v2797_v11 }
 0x10d   : > { %v987_v50 = vpop.f32.mrb[8].mxu0  ;;  %v1057_v53 = vpop.f32.mrb[8].mxu1 }
 0x10e   : > { %v988_v51 = vadd.f32 %v2295_v48, %v987_v50  ;;  %v2506_v52 = vpop.f32.mrb[9].mxu0  ;;  %v1058_v54 = vadd.f32 %v2296_v49, %v1057_v53  ;;  %v2517_v55 = vpop.f32.mrb[9].mxu1 }
 0x10f   : > { %v1854_v52 = vld [vmem:[%s3262_s3 + $0x10] sm:$0xff] }
 0x110   : > { %2561 = vmatpush3.msra.mxu0 %v988_v51  ;;  %2566 = vmatpush3.msra.mxu1 %v1058_v54 }
 0x111   : > { %2570 = vmatprep.subr.mxu0 %v2797_v11  ;;  %2575 = vmatprep.subr.mxu1 %v2797_v11 }
 0x115   : > { %v1127_v56 = vpop.f32.mrb[10].mxu0  ;;  %v1197_v57 = vpop.f32.mrb[10].mxu1 }
 0x116   : > { %v2528_v58 = vpop.f32.mrb[11].mxu0  ;;  %v2539_v59 = vpop.f32.mrb[11].mxu1  ;;  %v1128_v31 = vadd.f32 %v2297_v27, %v1127_v56  ;;  %v1198_v36 = vadd.f32 %v2298_v33, %v1197_v57  ;;  %v1855_v57 = vld [vmem:[%s3262_s3 + $0x18] sm:$0xff] }
 0x1d6   : > { %v1284_v1 = vpop.f32.mrb[12].mxu0  ;;  %v1360_v4 = vpop.f32.mrb[12].mxu1 }
 0x1d7   : > { %v1285_v2 = vadd.f32 %v1284_v1, %v1210_v0  ;;  %v2544_v5 = vpop.f32.mrb[13].mxu0  ;;  %v2549_v6 = vpop.f32.mrb[13].mxu1  ;;  %v1361_v7 = vadd.f32 %v1360_v4, %v1210_v0 }
 0x1d9   : > { %v1516_v8 = vsel %vm1211_vm2, %v1285_v2, -inf  ;;  %v1519_v9 = vsel %vm1211_vm2, %v1361_v7, -inf }
 0x1da   : > { %1517 = vmax.xlane.f32.xlu0 %v1516_v8 }
 0x1de   : > { %1520 = vmax.xlane.f32.xlu0 %v1519_v9  ;;  %v1436_v10 = vpop.f32.mrb[14].mxu0  ;;  %v1512_v12 = vpop.f32.mrb[14].mxu1 }
 0x1df   : > { %v1437_v3 = vadd.f32 %v1436_v10, %v1210_v0  ;;  %v2554_v13 = vpop.f32.mrb[15].mxu0  ;;  %v2559_v14 = vpop.f32.mrb[15].mxu1  ;;  %v1513_v15 = vadd.f32 %v1512_v12, %v1210_v0  ;;  %v2319_v12 = vld [vmem:[%s3263_s4] ss:$0 sm:$0xff] }
 0x1e1   : > { %v1522_v16 = vsel %vm1211_vm2, %v1437_v3, -inf  ;;  %v1525_v17 = vsel %vm1211_vm2, %v1513_v15, -inf }
 0x1e2   : > { %1523 = vmax.xlane.f32.xlu1 %v1522_v16 }
 0x1e6   : > { %1526 = vmax.xlane.f32.xlu1 %v1525_v17 }
 0x267   : > { %v1518_v19 = vpop.xlane.xlu0 %1517 }
 0x268   : > { %v1528_v20 = vsub.f32 %v1285_v2, %v1518_v19 }
 0x26a   : > { %v1532_v21 = vmul.f32 1.442695, %v1528_v20 }
 0x26b   : > { %v1521_v18 = vpop.xlane.xlu0 %1520 }
 0x26c   : > { %2715 = vpow2.f32 %v1532_v21  ;;  %v1529_v22 = vsub.f32 %v1361_v7, %v1521_v18 }
 0x26e   : > { %v1534_v23 = vmul.f32 1.442695, %v1529_v22 }
 0x26f   : > { %v1524_v24 = vpop.xlane.xlu1 %1523 }
 0x270   : > { %2717 = vpow2.f32 %v1534_v23  ;;  %v1530_v25 = vsub.f32 %v1437_v3, %v1524_v24 }
 0x272   : > { %v1536_v26 = vmul.f32 1.442695, %v1530_v25 }
 0x273   : > { %v1527_v28 = vpop.xlane.xlu1 %1526 }
 0x274   : > { %2719 = vpow2.f32 %v1536_v26  ;;  %v1531_v29 = vsub.f32 %v1513_v15, %v1527_v28 }
 0x276   : > { %v2716_v30 = vpop.eup %2715  ;;  %v1538_v32 = vmul.f32 1.442695, %v1531_v29 }
 0x277   : > { %2563 = vmatmul.mubr.msk.f32.vlgmr.msra.gmra.mrb[16].mxu0 %vm1211_vm2, %v2716_v30  ;;  %v1540_v34 = vsel %vm1211_vm2, %v2716_v30, 0.0 }
 0x278   : > { %2721 = vpow2.f32 %v1538_v32  ;;  %2571 = vmatpush3.msra.mxu0 %v1128_v31  ;;  %1541 = vadd.xlane.f32.xlu0 %v1540_v34 }
 0x279   : > { %2572 = vmatprep.mubr.msk.f32.mxu0 %vm2796_vm0, %v2797_v11  ;;  %2580 = vmatprep.subr.mxu0 %v2797_v11 }
 0x27a   : > { %v2718_v35 = vpop.eup %2717 }
 0x27b   : > { %2568 = vmatmul.mubr.msk.f32.vlgmr.msra.gmra.mrb[16].mxu1 %vm1211_vm2, %v2718_v35  ;;  %v1543_v37 = vsel %vm1211_vm2, %v2718_v35, 0.0 }
 0x27c   : > { %2576 = vmatpush3.msra.mxu1 %v1198_v36  ;;  %1544 = vadd.xlane.f32.xlu1 %v1543_v37 }
 0x27d   : > { %2577 = vmatprep.mubr.msk.f32.mxu1 %vm2796_vm0, %v2797_v11  ;;  %2585 = vmatprep.subr.mxu1 %v2797_v11 }
 0x27e   : > { %v2720_v38 = vpop.eup %2719 }
 0x27f   : > { %2573 = vmatmul.mubr.msk.f32.vlgmr.msra.gmra.mrb[18].mxu0 %vm1211_vm2, %v2720_v38  ;;  %v1546_v39 = vsel %vm1211_vm2, %v2720_v38, 0.0 }
 0x280   : > { %1547 = vadd.xlane.f32.xlu0 %v1546_v39  ;;  %2582 = vmatprep.mubr.msk.f32.mxu0 %vm2796_vm0, %v2797_v11 }
 0x281   : > { %2581 = vmatpush3.msra.mxu0 %v1852_v42 }
 0x282   : > { %v2722_v40 = vpop.eup %2721  ;;  %2590 = vmatprep.subr.mxu0 %v2797_v11 }
 0x283   : > { %2578 = vmatmul.mubr.msk.f32.vlgmr.msra.gmra.mrb[18].mxu1 %vm1211_vm2, %v2722_v40  ;;  %v1549_v41 = vsel %vm1211_vm2, %v2722_v40, 0.0 }
 0x284   : > { %1550 = vadd.xlane.f32.xlu1 %v1549_v41  ;;  %2587 = vmatprep.mubr.msk.f32.mxu1 %vm2796_vm0, %v2797_v11 }
 0x285   : > { %2586 = vmatpush3.msra.mxu1 %v1853_v43 }
 0x286   : > { %2595 = vmatprep.subr.mxu1 %v2797_v11 }
 0x305   : > { %v1542_v44 = vpop.xlane.xlu0 %1541 }
 0x306   : > { %2723 = vrcp.f32 %v1542_v44 }
 0x309   : > { %v1545_v45 = vpop.xlane.xlu1 %1544 }
 0x30a   : > { %2725 = vrcp.f32 %v1545_v45 }
 0x30d   : > { %v1548_v46 = vpop.xlane.xlu0 %1547 }
 0x30e   : > { %2727 = vrcp.f32 %v1548_v46 }
 0x310   : > { %v2724_v48 = vpop.eup %2723 }
 0x311   : > { %v1551_v47 = vpop.xlane.xlu1 %1550 }
 0x312   : > { %2729 = vrcp.f32 %v1551_v47 }
 0x314   : > { %v2726_v53 = vpop.eup %2725 }
 0x318   : > { %v2728_v58 = vpop.eup %2727 }
 0x31c   : > { %v2730_v62 = vpop.eup %2729 }
 0x34a   : > { %v1621_v49 = vpop.f32.mrb[16].mxu0 }
 0x34b   : > { %v1848_v50 = vmul.f32 %v2724_v48, %v1621_v49  ;;  %v2564_v51 = vpop.f32.mrb[17].mxu0 }
 0x34d   : > { %2583 = vmatmul.mubr.msk.f32.vlgmr.msra.gmra.mrb[20].mxu0 %vm1211_vm2, %v1848_v50 }
 0x34e   : > { %v1694_v54 = vpop.f32.mrb[16].mxu1  ;;  %2591 = vmatpush3.msra.mxu0 %v1854_v52  ;;  %2592 = vmatprep.mubr.msk.f32.mxu0 %vm2796_vm0, %v2797_v11 }
 0x34f   : > { %v1849_v55 = vmul.f32 %v2726_v53, %v1694_v54  ;;  %v2569_v56 = vpop.f32.mrb[17].mxu1 }
 0x351   : > { %2588 = vmatmul.mubr.msk.f32.vlgmr.msra.gmra.mrb[20].mxu1 %vm1211_vm2, %v1849_v55 }
 0x352   : > { %v1767_v59 = vpop.f32.mrb[18].mxu0  ;;  %2596 = vmatpush3.msra.mxu1 %v1855_v57  ;;  %2597 = vmatprep.mubr.msk.f32.mxu1 %vm2796_vm0, %v2797_v11 }
 0x353   : > { %v1850_v60 = vmul.f32 %v2728_v58, %v1767_v59  ;;  %v2574_v61 = vpop.f32.mrb[19].mxu0 }
 0x355   : > { %2593 = vmatmul.mubr.msk.f32.vlgmr.msra.gmra.mrb[22].mxu0 %vm1211_vm2, %v1850_v60 }
 0x356   : > { %v1840_v63 = vpop.f32.mrb[18].mxu1 }
 0x357   : > { %v1851_v0 = vmul.f32 %v2730_v62, %v1840_v63  ;;  %v2579_v1 = vpop.f32.mrb[19].mxu1 }
 0x359   : > { %2598 = vmatmul.mubr.msk.f32.vlgmr.msra.gmra.mrb[22].mxu1 %vm1211_vm2, %v1851_v0 }
 0x420   : > { %v1925_v2 = vpop.f32.mrb[20].mxu0 }
 0x421   : > { %v2584_v4 = vpop.f32.mrb[21].mxu0 }
 0x424   : > { %v1998_v5 = vpop.f32.mrb[20].mxu1 }
 0x425   : > { %v2148_v6 = vadd.f32 %v1998_v5, %v1925_v2  ;;  %v2589_v7 = vpop.f32.mrb[21].mxu1 }
 0x428   : > { %v2071_v8 = vpop.f32.mrb[22].mxu0 }
 0x429   : > { %v2149_v11 = vadd.f32 %v2148_v6, %v2071_v8  ;;  %v2594_v9 = vpop.f32.mrb[23].mxu0 }
 0x42c   : > { %v2144_v10 = vpop.f32.mrb[22].mxu1 }
 0x42d   : > { %v2150_v3 = vadd.f32 %v2149_v11, %v2144_v10  ;;  %v2599_v13 = vpop.f32.mrb[23].mxu1 }
 0x42f   : > { %v2158_v14 = vadd.f32 %v2319_v12, %v2150_v3 }
 0x431   : > { %2159 = vst [vmem:[%s215_s15] sm:$0xff] %v2158_v14 }
 0x432   : > { %2744 = shalt.err (!%p2741_p3)
}
 0x433   : > { %s2745_s8 = scalar_lea.hbm %s3217_s25, 128  ;;  %s2749_s11 = scalar_lea.hbm %s3264_s5, 256 }
 0x434   : > { %p2746_p4 = scmp.ne.s32.totalorder %s3217_s25, %s2745_s8  ;;  %p2750_p9 = scmp.lt.u32.totalorder %s3217_s25, %s3264_s5 }
 0x435   : > { %p2751_p10 = scmp.lt.u32.totalorder %s2749_s11, %s2745_s8  ;;  %p2753_p12 = scmp.lt.u32.totalorder %s2745_s8, %s3217_s25 }
 0x436   : > { %p2747_p7 = pnand %p2746_p4, %p2868_p5 }
 0x437   : > { %p2752_p11 = por %p2751_p10, %p2750_p9 }
 0x438   : > { %p2748_p8 = pneg %p2747_p7 }
 0x439   : > { %p2754_p13 = por %p2753_p12, %p2752_p11 }
 0x43b   : > { %p2755_p0 = pnand %p2754_p13, %p2748_p8 }
 0x43d   : > { %2758 = shalt.err (!%p2755_p0)
}
 0x43e   : > { %2672 = dma.vmem_to_hbm [thread:$0]  (%p2868_p5), %s3219_s16, 128, %s3217_s25, %s2161_s26  }
 0x43f PF: > { %p2678_p1 = scmp.ge.s32.totalorder %s2793_s21, 2  ;;  %s2186_s14 = sand.u32 1, %s2781_s18  }
 0x440   : > { %s2187_s15 = scalar_lea.sflag [#allocation3], %s2186_s14 }
 0x441   : > { %p2675_p2 = pnand %p2678_p1, %p2872_p6 }
 0x443   : > { %2776 = dma.done.wait (!%p2675_p2), %s2187_s15, 128  }
 0x444   : > { %2778 = vsyncadd (!%p2675_p2), %s2187_s15, 4294967168  ;;  %p15_p3 = scmp.ge.s32.totalorder %s2855_s24, 4   ;;  %s3267_s18 = smov %s2785_s19 }
 0x445   : > { %s3268_s19 = smov %s2789_s20  ;;  %s3269_s20 = smov %s2866_s27 }
 0x446   : > { %s3270_s21 = smov %s2855_s24  ;;  %17 = sbr.rel (!%p15_p3) target bundleno = 3 (0x3), region = 79 }
 0x44d   :  { %2192 = vsyncpa [#allocation3], 1 }
 0x44e   :  { %2194 = vsyncpa [#allocation3 + $0x1], 1 }

</bundles_post_ra>
